<compile_context>
chip_gen: v7x
topology: tpu7x:2x2x1
jax: 0.10.0
libtpu: 0.0.40
codegen_flags: <defaults>
</compile_context>

<pallas_src>
import jax
import jax.numpy as jnp
from jax import lax
from jax.experimental import pallas as pl
from jax.experimental.pallas import tpu as pltpu


def _attention_kernel(x_ref, wqkv_ref, wproj_ref, bproj_ref,
                      out_ref, wgt_ref, acc_ref):
    # x_ref:    (1, N, C)      input tokens for one batch element
    # wqkv_ref: (H, C, 3*hd)   per-head [q|k|v] projection (pre-transposed,
    #                          scale folded into q columns)
    # wproj_ref:(H, hd, C)     per-head slice of proj weight (pre-transposed)
    # bproj_ref:(1, C)         proj bias
    # out_ref:  (1, N, C)      projected output (written on last head step)
    # wgt_ref:  (1, 1, N, N)   softmax attention weights for this (b, h)
    # acc_ref:  (N, C) f32     output-projection accumulator across heads
    h = pl.program_id(1)
    last_h = pl.num_programs(1) - 1

    x = x_ref[0]                                   # (N, C)
    hd = wproj_ref.shape[1]

    # Fused per-head q/k/v projection: (N, C) @ (C, 3*hd) -> (N, 3*hd).
    w_h = wqkv_ref[h]                              # dynamic first-axis index
    qkv = jnp.dot(x, w_h, preferred_element_type=jnp.float32)
    q = qkv[:, 0 * hd:1 * hd]                      # already scaled
    k = qkv[:, 1 * hd:2 * hd]
    v = qkv[:, 2 * hd:3 * hd]

    # scores: contract on hd directly — no explicit transpose of k.
    s = lax.dot_general(q, k, (((1,), (1,)), ((), ())),
                        preferred_element_type=jnp.float32)      # (N, N)
    s = s - jnp.max(s, axis=-1, keepdims=True)
    p = jnp.exp(s)
    p = p * pl.reciprocal(jnp.sum(p, axis=-1, keepdims=True), approx=True)
    wgt_ref[0, 0] = p

    # Per-head output contribution, already projected to full C width so the
    # accumulator stores are lane-dense.
    o = jnp.dot(p, v, preferred_element_type=jnp.float32)        # (N, hd)
    contrib = jnp.dot(o, wproj_ref[h],
                      preferred_element_type=jnp.float32)        # (N, C)

    @pl.when(h == 0)
    def _():
        acc_ref[...] = jnp.zeros_like(acc_ref)

    acc_ref[...] += contrib

    @pl.when(h == last_h)
    def _():
        out_ref[0] = (acc_ref[...] + bproj_ref[...]).astype(out_ref.dtype)


def attention_forward(x, w_qkv, w_proj, b_proj, num_heads, qk_scale=None):
    """x: (B, N, C); w_qkv: (3C, C) PyTorch layout; w_proj: (C, C); b_proj: (C,)."""
    B, N, C = x.shape
    H = num_heads
    hd = C // H
    scale = qk_scale if qk_scale is not None else hd ** -0.5

    # Host-side (one-time) weight preparation: transpose to (in, out) layout,
    # split per head, fold the qk scale into the q projection.
    wq = jnp.transpose(w_qkv[0 * C:1 * C].reshape(H, hd, C), (0, 2, 1)) * scale
    wk = jnp.transpose(w_qkv[1 * C:2 * C].reshape(H, hd, C), (0, 2, 1))
    wv = jnp.transpose(w_qkv[2 * C:3 * C].reshape(H, hd, C), (0, 2, 1))
    w_qkv_heads = jnp.concatenate([wq, wk, wv], axis=-1)              # (H, C, 3*hd)
    w_proj_heads = jnp.transpose(w_proj.reshape(C, H, hd), (1, 2, 0))  # (H, hd, C)
    b_proj2d = b_proj.reshape(1, C)

    out_shapes = (
        jax.ShapeDtypeStruct((B, N, C), x.dtype),          # projected output
        jax.ShapeDtypeStruct((B, H, N, N), jnp.float32),   # attention weights
    )

    grid_spec = pltpu.PrefetchScalarGridSpec(
        num_scalar_prefetch=0,
        grid=(B, H),   # B parallel, H innermost reduction (proj accumulation)
        in_specs=[
            pl.BlockSpec((1, N, C), lambda b, h: (b, 0, 0)),          # x
            pl.BlockSpec((H, C, 3 * hd), lambda b, h: (0, 0, 0)),     # wqkv (constant)
            pl.BlockSpec((H, hd, C), lambda b, h: (0, 0, 0)),         # wproj (constant)
            pl.BlockSpec((1, C), lambda b, h: (0, 0)),                # bias (constant)
        ],
        out_specs=[
            pl.BlockSpec((1, N, C), lambda b, h: (b, 0, 0)),          # out (resident over h)
            pl.BlockSpec((1, 1, N, N), lambda b, h: (b, h, 0, 0)),    # per-head weights
        ],
        scratch_shapes=[pltpu.VMEM((N, C), jnp.float32)],
    )

    return pl.pallas_call(
        _attention_kernel,
        out_shape=out_shapes,
        grid_spec=grid_spec,
        compiler_params=pltpu.CompilerParams(
            dimension_semantics=("parallel", "arbitrary")),
    )(x, w_qkv_heads, w_proj_heads, b_proj2d)


def attention_reference(x, w_qkv, w_proj, b_proj, num_heads):
    B, N, C = x.shape
    H = num_heads
    hd = C // H
    scale = hd ** -0.5
    qkv = jnp.einsum("bnc,oc->bno", x, w_qkv)            # (B, N, 3C)
    qkv = qkv.reshape(B, N, 3, H, hd).transpose(2, 0, 3, 1, 4)
    q, k, v = qkv[0], qkv[1], qkv[2]                     # (B, H, N, hd)
    attn = jnp.einsum("bhqd,bhkd->bhqk", q, k) * scale
    attn = jax.nn.softmax(attn, axis=-1)
    out = jnp.einsum("bhqk,bhkd->bhqd", attn, v)
    out = out.transpose(0, 2, 1, 3).reshape(B, N, C)
    out = jnp.einsum("bnc,oc->bno", out, w_proj) + b_proj
    return out, attn


if __name__ == "__main__":
    # Small shapes consistent with the module: B=2 batches, N=8 tokens,
    # C=32 channels, num_heads=8 (head_dim=4).
    B, N, C, H = 2, 8, 32, 8

    key = jax.random.PRNGKey(0)
    kx, kqkv, kproj, kbias = jax.random.split(key, 4)
    x = jax.random.normal(kx, (B, N, C), dtype=jnp.float32)
    # nn.Linear(dim, dim*3, bias=False): weight (3C, C)
    w_qkv = jax.random.normal(kqkv, (3 * C, C), dtype=jnp.float32) * 0.05
    # nn.Linear(dim, dim): weight (C, C), bias (C,)
    w_proj = jax.random.normal(kproj, (C, C), dtype=jnp.float32) * 0.05
    b_proj = jax.random.normal(kbias, (C,), dtype=jnp.float32) * 0.01

    out, weights = attention_forward(x, w_qkv, w_proj, b_proj, H)
    out = jax.block_until_ready(out)
    weights = jax.block_until_ready(weights)

    # Sanity check against a pure-JAX reference of the PyTorch forward.
    # (tolerance slightly loosened vs. previous version because the softmax
    # denominator now uses the EUP approximate reciprocal.)
    ref_out, ref_w = attention_reference(x, w_qkv, w_proj, b_proj, H)
    assert out.shape == (B, N, C) and weights.shape == (B, H, N, N)
    assert jnp.allclose(out, ref_out, atol=2e-3, rtol=2e-3)
    assert jnp.allclose(weights, ref_w, atol=2e-3, rtol=2e-3)

    print("KERNEL_OK")
</pallas_src>

<mosaic_0001>
module attributes {stable_mosaic.version = 11 : i64} {
  func.func @_attention_kernel(%arg0: i32, %arg1: i32, %arg2: memref<1x8x32xf32, #tpu.memory_space<vmem>>, %arg3: memref<8x32x12xf32, #tpu.memory_space<vmem>>, %arg4: memref<8x4x32xf32, #tpu.memory_space<vmem>>, %arg5: memref<1x32xf32, #tpu.memory_space<vmem>>, %arg6: memref<1x8x32xf32, #tpu.memory_space<vmem>>, %arg7: memref<1x1x8x8xf32, #tpu.memory_space<vmem>>, %arg8: memref<8x32xf32, #tpu.memory_space<vmem>>) attributes {dimension_semantics = [#tpu.dimension_semantics<parallel>, #tpu.dimension_semantics<arbitrary>], iteration_bounds = array<i64: 2, 8>, scalar_prefetch = 0 : i64, scratch_operands = 1 : i64, tpu.core_type = #tpu.core_type<tc>, window_params = [{transform_indices = @transform_0, window_bounds = array<i64: 1, 8, 32>}, {pipeline_mode = #tpu.pipeline_mode<synchronous>, transform_indices = @transform_1, window_bounds = array<i64: 8, 32, 12>}, {pipeline_mode = #tpu.pipeline_mode<synchronous>, transform_indices = @transform_2, window_bounds = array<i64: 8, 4, 32>}, {pipeline_mode = #tpu.pipeline_mode<synchronous>, transform_indices = @transform_3, window_bounds = array<i64: 1, 32>}, {transform_indices = @transform_4, window_bounds = array<i64: 1, 8, 32>}, {transform_indices = @transform_5, window_bounds = array<i64: 1, 1, 8, 8>}]} {
    %c0 = arith.constant 0 : index
    %c0_0 = arith.constant 0 : index
    %c0_1 = arith.constant 0 : index
    %0 = vector.load %arg2[%c0, %c0_0, %c0_1] : memref<1x8x32xf32, #tpu.memory_space<vmem>>, vector<1x8x32xf32>
    %1 = vector.shape_cast %0 : vector<1x8x32xf32> to vector<8x32xf32>
    %2 = arith.index_cast %arg1 : i32 to index
    %c0_2 = arith.constant 0 : index
    %c0_3 = arith.constant 0 : index
    %3 = vector.load %arg3[%2, %c0_2, %c0_3] : memref<8x32x12xf32, #tpu.memory_space<vmem>>, vector<1x32x12xf32>
    %4 = vector.shape_cast %3 : vector<1x32x12xf32> to vector<32x12xf32>
    %cst = arith.constant dense<0.000000e+00> : vector<8x12xf32>
    %5 = tpu.matmul %1, %4, %cst {dimension_numbers = #tpu.dot_dimension_numbers<[1], [0], [0], [1], [0, 0, 1, 1], [], []>} : vector<8x32xf32>, vector<32x12xf32>, vector<8x12xf32> -> vector<8x12xf32>
    %6 = vector.extract_strided_slice %5 {offsets = [0, 0], sizes = [8, 4], strides = [1, 1]} : vector<8x12xf32> to vector<8x4xf32>
    %7 = vector.extract_strided_slice %5 {offsets = [0, 4], sizes = [8, 4], strides = [1, 1]} : vector<8x12xf32> to vector<8x4xf32>
    %8 = vector.extract_strided_slice %5 {offsets = [0, 8], sizes = [8, 4], strides = [1, 1]} : vector<8x12xf32> to vector<8x4xf32>
    %cst_4 = arith.constant dense<0.000000e+00> : vector<8x8xf32>
    %9 = tpu.matmul %6, %7, %cst_4 {dimension_numbers = #tpu.dot_dimension_numbers<[1], [1], [0], [0], [0, 0, 1, 0], [], []>} : vector<8x4xf32>, vector<8x4xf32>, vector<8x8xf32> -> vector<8x8xf32>
    %cst_5 = arith.constant dense<0xFF800000> : vector<8xf32>
    %10 = vector.multi_reduction <maximumf>, %9, %cst_5 [1] : vector<8x8xf32> to vector<8xf32>
    %11 = vector.shape_cast %10 : vector<8xf32> to vector<8x1xf32>
    %12 = vector.broadcast %11 : vector<8x1xf32> to vector<8x8xf32>
    %13 = arith.subf %9, %12 : vector<8x8xf32>
    %14 = math.exp %13 : vector<8x8xf32>
    %cst_6 = arith.constant dense<0.000000e+00> : vector<8xf32>
    %15 = vector.multi_reduction <add>, %14, %cst_6 [1] : vector<8x8xf32> to vector<8xf32>
    %16 = vector.shape_cast %15 : vector<8xf32> to vector<8x1xf32>
    %17 = tpu.reciprocal %16 {approx = true} : vector<8x1xf32> -> vector<8x1xf32>
    %18 = vector.broadcast %17 : vector<8x1xf32> to vector<8x8xf32>
    %19 = arith.mulf %14, %18 : vector<8x8xf32>
    %c0_7 = arith.constant 0 : index
    %c0_8 = arith.constant 0 : index
    %c0_9 = arith.constant 0 : index
    %c0_10 = arith.constant 0 : index
    %20 = vector.load %arg7[%c0_7, %c0_8, %c0_9, %c0_10] : memref<1x1x8x8xf32, #tpu.memory_space<vmem>>, vector<1x1x8x8xf32>
    %21 = vector.shape_cast %20 : vector<1x1x8x8xf32> to vector<8x8xf32>
    %22 = vector.shape_cast %19 : vector<8x8xf32> to vector<1x1x8x8xf32>
    tpu.vector_store %arg7[%c0_7, %c0_8, %c0_9, %c0_10], %22 {strides = array<i32>} : memref<1x1x8x8xf32, #tpu.memory_space<vmem>>, vector<1x1x8x8xf32>,
    %cst_11 = arith.constant dense<0.000000e+00> : vector<8x4xf32>
    %23 = tpu.matmul %19, %8, %cst_11 {dimension_numbers = #tpu.dot_dimension_numbers<[1], [0], [0], [1], [0, 0, 1, 1], [], []>} : vector<8x8xf32>, vector<8x4xf32>, vector<8x4xf32> -> vector<8x4xf32>
    %24 = arith.index_cast %arg1 : i32 to index
    %c0_12 = arith.constant 0 : index
    %c0_13 = arith.constant 0 : index
    %25 = vector.load %arg4[%24, %c0_12, %c0_13] : memref<8x4x32xf32, #tpu.memory_space<vmem>>, vector<1x4x32xf32>
    %26 = vector.shape_cast %25 : vector<1x4x32xf32> to vector<4x32xf32>
    %cst_14 = arith.constant dense<0.000000e+00> : vector<8x32xf32>
    %27 = tpu.matmul %23, %26, %cst_14 {dimension_numbers = #tpu.dot_dimension_numbers<[1], [0], [0], [1], [0, 0, 1, 1], [], []>} : vector<8x4xf32>, vector<4x32xf32>, vector<8x32xf32> -> vector<8x32xf32>
    %c0_i32 = arith.constant 0 : i32
    %28 = arith.cmpi eq, %arg1, %c0_i32 : i32
    %29 = arith.extui %28 : i1 to i32
    %c0_i32_15 = arith.constant 0 : i32
    %30 = arith.cmpi ne, %29, %c0_i32_15 : i32
    scf.if %30 {
      %cst_21 = arith.constant 0.000000e+00 : f32
      %37 = vector.broadcast %cst_21 : f32 to vector<8x32xf32>
      %c0_22 = arith.constant 0 : index
      %c0_23 = arith.constant 0 : index
      %38 = vector.load %arg8[%c0_22, %c0_23] : memref<8x32xf32, #tpu.memory_space<vmem>>, vector<8x32xf32>
      tpu.vector_store %arg8[%c0_22, %c0_23], %37 {strides = array<i32>} : memref<8x32xf32, #tpu.memory_space<vmem>>, vector<8x32xf32>,
    } else {
    }
    %c0_16 = arith.constant 0 : index
    %c0_17 = arith.constant 0 : index
    %31 = vector.load %arg8[%c0_16, %c0_17] : memref<8x32xf32, #tpu.memory_space<vmem>>, vector<8x32xf32>
    %32 = arith.addf %31, %27 : vector<8x32xf32>
    %c0_18 = arith.constant 0 : index
    %c0_19 = arith.constant 0 : index
    %33 = vector.load %arg8[%c0_18, %c0_19] : memref<8x32xf32, #tpu.memory_space<vmem>>, vector<8x32xf32>
    tpu.vector_store %arg8[%c0_18, %c0_19], %32 {strides = array<i32>} : memref<8x32xf32, #tpu.memory_space<vmem>>, vector<8x32xf32>,
    %c7_i32 = arith.constant 7 : i32
    %34 = arith.cmpi eq, %arg1, %c7_i32 : i32
    %35 = arith.extui %34 : i1 to i32
    %c0_i32_20 = arith.constant 0 : i32
    %36 = arith.cmpi ne, %35, %c0_i32_20 : i32
    scf.if %36 {
      %c0_21 = arith.constant 0 : index
      %c0_22 = arith.constant 0 : index
      %37 = vector.load %arg8[%c0_21, %c0_22] : memref<8x32xf32, #tpu.memory_space<vmem>>, vector<8x32xf32>
      %c0_23 = arith.constant 0 : index
      %c0_24 = arith.constant 0 : index
      %38 = vector.load %arg5[%c0_23, %c0_24] : memref<1x32xf32, #tpu.memory_space<vmem>>, vector<1x32xf32>
      %39 = vector.broadcast %38 : vector<1x32xf32> to vector<8x32xf32>
      %40 = arith.addf %37, %39 : vector<8x32xf32>
      %c0_25 = arith.constant 0 : index
      %c0_26 = arith.constant 0 : index
      %c0_27 = arith.constant 0 : index
      %41 = vector.load %arg6[%c0_25, %c0_26, %c0_27] : memref<1x8x32xf32, #tpu.memory_space<vmem>>, vector<1x8x32xf32>
      %42 = vector.shape_cast %41 : vector<1x8x32xf32> to vector<8x32xf32>
      %43 = vector.shape_cast %40 : vector<8x32xf32> to vector<1x8x32xf32>
      tpu.vector_store %arg6[%c0_25, %c0_26, %c0_27], %43 {strides = array<i32>} : memref<1x8x32xf32, #tpu.memory_space<vmem>>, vector<1x8x32xf32>,
    } else {
    }
    return
  }
  func.func @transform_0(%arg0: i32, %arg1: i32) -> (i32, i32, i32) {
    %c0_i32 = arith.constant 0 : i32
    %c0_i32_0 = arith.constant 0 : i32
    %c0_i32_1 = arith.constant 0 : i32
    return %arg0, %c0_i32, %c0_i32_0 : i32, i32, i32
  }
  func.func @transform_1(%arg0: i32, %arg1: i32) -> (i32, i32, i32) {
    %c0_i32 = arith.constant 0 : i32
    %c0_i32_0 = arith.constant 0 : i32
    %c0_i32_1 = arith.constant 0 : i32
    %c0_i32_2 = arith.constant 0 : i32
    return %c0_i32, %c0_i32_0, %c0_i32_1 : i32, i32, i32
  }
  func.func @transform_2(%arg0: i32, %arg1: i32) -> (i32, i32, i32) {
    %c0_i32 = arith.constant 0 : i32
    %c0_i32_0 = arith.constant 0 : i32
    %c0_i32_1 = arith.constant 0 : i32
    %c0_i32_2 = arith.constant 0 : i32
    return %c0_i32, %c0_i32_0, %c0_i32_1 : i32, i32, i32
  }
  func.func @transform_3(%arg0: i32, %arg1: i32) -> (i32, i32) {
    %c0_i32 = arith.constant 0 : i32
    %c0_i32_0 = arith.constant 0 : i32
    %c0_i32_1 = arith.constant 0 : i32
    return %c0_i32, %c0_i32_0 : i32, i32
  }
  func.func @transform_4(%arg0: i32, %arg1: i32) -> (i32, i32, i32) {
    %c0_i32 = arith.constant 0 : i32
    %c0_i32_0 = arith.constant 0 : i32
    %c0_i32_1 = arith.constant 0 : i32
    return %arg0, %c0_i32, %c0_i32_0 : i32, i32, i32
  }
  func.func @transform_5(%arg0: i32, %arg1: i32) -> (i32, i32, i32, i32) {
    %c0_i32 = arith.constant 0 : i32
    %c0_i32_0 = arith.constant 0 : i32
    %c0_i32_1 = arith.constant 0 : i32
    return %arg0, %arg1, %c0_i32, %c0_i32_0 : i32, i32, i32, i32
  }
}

</mosaic_0001>

<bundles_post_ra>
// kernel: tpu_custom_call.1
= control target key start
LH: loop header
LB: loop body
LE: loop exit
PB: predicated region body
PF: predicated region fallthrough
CT: control target
= control target key end

     0   :  { %s1363_s0 = inlined_call_operand.vmem [shape: f32[2,8,32], index: 0, kind: input, shape index: {}]   ;;  %s1364_s1 = inlined_call_operand.vmem [shape: f32[8,32,12], index: 1, kind: input, shape index: {}]   ;;  %s1365_s2 = inlined_call_operand.vmem [shape: f32[8,4,32], index: 2, kind: input, shape index: {}]   ;;  %s1366_s3 = inlined_call_operand.vmem [shape: f32[1,32], index: 3, kind: input, shape index: {}]   ;;  %s1367_s4 = inlined_call_operand.hbm [shape: f32[2,8,32], index: 4, kind: output, shape index: {0}]   ;;  %s1368_s5 = inlined_call_operand.hbm [shape: f32[2,8,8,8], index: 5, kind: output, shape index: {1}]  }
   0x1   :  { %1375 = sst [smem:[#allocation12_spill]] %s1363_s0 }
   0x2   :  { %1376 = sst [smem:[#allocation13_spill]] %s1364_s1 }
   0x3   :  { %1377 = sst [smem:[#allocation14_spill]] %s1365_s2 }
   0x4   :  { %1378 = sst [smem:[#allocation15_spill]] %s1366_s3 }
   0x5   :  { %1379 = sst [smem:[#allocation16_spill]] %s1367_s4 }
   0x6   :  { %11 = vsyncpa [#allocation4], 0 }
   0x7   :  { %13 = vsyncpa [#allocation4 + $0x1], 0 }
   0x8   :  { %14 = vsyncpa [#allocation6], 0 }
   0x9   :  { %16 = vsyncpa [#allocation6 + $0x1], 0  ;;  %s1106_s18 = smov 0   ;;  %s1108_s19 = smov 0  }
   0xa   :  { %s1110_s20 = smov 0   ;;  %s1112_s21 = smov 0  }
   0xb   :  { %s1114_s22 = smov 0   ;;  %s1116_s23 = smov 0  }
   0xc   :  { %s1118_s24 = smov 0   ;;  %s1120_s25 = smov 0  }
   0xd   :  { %s1122_s26 = smov 0   ;;  %s1124_s27 = smov 0  }
   0xe   :  { %s1126_s28 = smov 0  }
   0xf LB: > { %1380 = sst [smem:[#allocation9_spill]] %s1062_s27  ;;  %s737_s29 = sadd.s32 4294967295, %s1066_s28   ;;  %s1066_s28 = sphi %s1126_s28, %s22_s28   ;;  %s1062_s27 = sphi %s1124_s27, %s1400_s27   ;;  %s1058_s26 = sphi %s1122_s26, %s1408_s26   ;;  %s1054_s25 = sphi %s1120_s25, %s1398_s25   ;;  %s1050_s24 = sphi %s1118_s24, %s1407_s24   ;;  %s1046_s23 = sphi %s1116_s23, %s1406_s23   ;;  %s1042_s22 = sphi %s1114_s22, %s1405_s22   ;;  %s1038_s21 = sphi %s1112_s21, %s1404_s21   ;;  %s1034_s20 = sphi %s1110_s20, %s1403_s20   ;;  %s1030_s19 = sphi %s1108_s19, %s1402_s19   ;;  %s1026_s18 = sphi %s1106_s18, %s1401_s18  }
  0x10   : > { %s738_s30 = sadd.s32 4294967294, %s1066_s28   ;;  %s31_s6 = sadd.s32 1, %s1058_s26 }
  0x11   : > { %s34_s7 = sadd.s32 1, %s1062_s27  ;;  %p32_p0 = scmp.ge.s32.totalorder %s31_s6, 8 }
  0x12   : > { %s130_s8 = sadd.s32 1, %s1046_s23  ;;  %p140_p1 = scmp.ne.s32.totalorder %s1046_s23, %s1042_s22 }
  0x13   : > { %p1168_p2 = scmp.eq.s32.totalorder %s737_s29, 15  ;;  %s1410_s6 = smov (%p32_p0, %s31_s6), 0 }
  0x14   : > { %1382 = sst [smem:[#allocation10_spill]] %s1410_s6  ;;  %s1412_s7 = smov (!%p32_p0, %s34_s7), %s1062_s27 }
  0x15   : > { %p1177_p3 = por %p1168_p2, %p140_p1  ;;  %p146_p4 = scmp.ne.s32.totalorder %s1042_s22, %s1038_s21 }
  0x16   : > { %p36_p5 = scmp.ge.s32.totalorder %s1412_s7, 2  ;;  %p1183_p6 = scmp.eq.s32.totalorder %s738_s30, 15 }
  0x17   : > { %s154_s12 = ssub.s32 %s1058_s26, %s1410_s6  ;;  %s158_s13 = sadd.s32 1, %s1034_s20 }
  0x18   : > { %s1414_s7 = smov (%p36_p5, %s1412_s7), 0  ;;  %p1194_p7 = por %p1183_p6, %p146_p4 }
  0x19   : > { %1385 = sst [smem:[#allocation11_spill]] %s1414_s7  ;;  %p168_p8 = scmp.ne.s32.totalorder %s1034_s20, %s1030_s19 }
  0x1a   : > { %s127_s15 = ssub.s32 %s1062_s27, %s1414_s7  ;;  %p174_p9 = scmp.ne.s32.totalorder %s1030_s19, %s1026_s18 }
  0x1b   : > { %p128_p10 = scmp.eq.s32.totalorder %s127_s15, 0  ;;  %s155_s16 = sor.u32 %s154_s12, %s127_s15 }
  0x1c   : > { %p156_p11 = scmp.eq.s32.totalorder %s155_s16, 0  ;;  %p1206_p12 = por %p168_p8, %p1168_p2 }
  0x1d   : > { %s1211_s29 = scalar_select %p128_p10, %s1046_s23, %s130_s8  }
  0x1e   : > { %s1214_s30 = scalar_select %p156_p11, %s1034_s20, %s158_s13  }
  0x1f   : > { %p1218_p13 = por %p174_p9, %p1183_p6  ;;  %p741_p0 = scmp.ge.s32.totalorder %s1066_s28, 1 }
  0x20   : > { %p209_p1 = scmp.lt.s32.totalorder %s1066_s28, 17 }
  0x21   : > { %s1388_s6 = scalar_select %p1218_p13, 1, 0 }
  0x22   : > { %p210_p4 = pnand %p741_p0, %p209_p1 }
  0x23   : > { %s1370_s9 = sand.u32 (!%p210_p4), 1, %s1042_s22   ;;  %s745_s12 = sshll.u32 (!%p210_p4), %s1050_s24, 5  ;;  %v1068_v0 = vmov (!%p210_p4), 0.0|0.0   ;;  %vm1069_vm0 = vmmov (!%p210_p4), 0   ;;  %v1070_v1 = vmov (!%p210_p4), 0.0   ;;  %vm252_vm1 = vcmask (!%p210_p4), 261120  }
  0x24   : > { %213 = sbr.rel (%p210_p4) target bundleno = 1401 (0x579), region = 36  ;;  %s1228_s8 = sshll.u32 (!%p210_p4), %s1370_s9, 3  ;;  %800 = vmatprep.subr.bf16.mxu0 (!%p210_p4), %v1068_v0  ;;  %782 = vmatprep.mubr.msk.f32.mxu0 (!%p210_p4), %vm1069_vm0, %v1070_v1  ;;  %vm329_vm2 = vcmask (!%p210_p4), 31744   ;;  %vm404_vm3 = vcmask (!%p210_p4), 64512   ;;  %vm499_vm4 = vcmask (!%p210_p4), 1043456  }
  0x25   : > { %s1389_s1 = sld [smem:[#allocation13_spill]] (!%p210_p4)  ;;  %p241_p2 = scmp.lt.s32.totalorder (!%p210_p4), %s1054_s25, 1  ;;  %785 = vmatprep.subr.mxu1 (!%p210_p4), %v1070_v1  ;;  %787 = vmatprep.mubr.msk.f32.mxu1 (!%p210_p4), %vm1069_vm0, %v1070_v1 }
  0x26   : > { %s1390_s0 = sld [smem:[#allocation12_spill]] (!%p210_p4)  ;;  %s1391_s2 = sld [smem:[#allocation14_spill]] (!%p210_p4) }
  0x27   : > { %p753_p5 = scmp.ne.s32.totalorder (!%p210_p4), %s1050_s24, 0 }
  0x2b   : > { %s247_s15 = scalar_lea.vmem %s1389_s1, %s745_s12  ;;  %s1071_s1 = smov 124   ;;  %v1073_v29 = vmov (!%p753_p5), 0.0  }
  0x2c   : > { %v248_v2 = vld [vmem:[%s247_s15] sm:$0xff]  ;;  %v249_v3 = vld [vmem:[%s247_s15 + $0x8] sm:$0xff]  ;;  %v250_v4 = vld [vmem:[%s247_s15 + $0x10] sm:$0xff]  ;;  %s242_s16 = scalar_select %p241_p2, %s1054_s25, 1 }
  0x2d   : > { %v801_v5 = vpack.c.bf16 %v249_v3, %v248_v2  ;;  %v251_v6 = vld [vmem:[%s247_s15 + $0x18] sm:$0xff]  ;;  %s1371_s12 = sand.u32 1, %s1030_s19   ;;  %577 = vst.msk [vmem:[#allocation2] sm:$0xff] (!%p753_p5), %vm252_vm1, %v1073_v29 }
  0x2e   : > { %v804_v7 = vpack.c.bf16 %v251_v6, %v250_v4  ;;  %s744_s9 = sshll.u32 %s242_s16, 3 }
  0x2f   : > { %802 = vmatpush3.bf16.msra.mxu0 %v801_v5  ;;  %s244_s13 = scalar_lea.vmem %s1390_s0, %s744_s9  ;;  %s750_s9 = sshll.u32 %s1050_s24, 2 }
  0x30   : > { %803 = vmatprep.subr.bf16.mxu0 %v1068_v0  ;;  %v245_v8 = vld [vmem:[%s244_s13] sm:$0xff]  ;;  %s494_s11 = scalar_lea.vmem %s1391_s2, %s750_s9  ;;  %s1254_s13 = sshll.u32 %s1371_s12, 3 }
  0x31   : > { %v495_v20 = vld [vmem:[%s494_s11] sm:$0xf]  ;;  %s233_s9 = scalar_lea.vmem [#allocation3], %s1228_s8 }
  0x33   : > { %805 = vmatpush3.bf16.msra.mxu0 %v804_v7 }
  0x34   : > { %795 = vmatprep.subr.mxu0 %v1070_v1 }
  0x36   : > { %783 = vmatmul.mubr.msk.f32.vlgmr.msra.gmra.mrb[0].mxu0 %vm252_vm1, %v245_v8 }
  0x37   : > { %797 = vmatprep.mubr.msk.f32.mxu0 %vm1069_vm0, %v1070_v1  ;;  %796 = vmatpush3.msk.msra.mxu0 %vm499_vm4, %v495_v20 }
 0x109   : > { %v322_v9 = vpop.f32.mrb[0].mxu0 }
 0x10a   : > { %327 = vrot.lane.b32.xlu0 %v322_v9, %s1071_s1  ;;  %v784_v10 = vpop.f32.mrb[1].mxu0  ;;  %s1072_s1 = smov 120  }
 0x17c   : > { %v328_v11 = vpop.permute.xlu0 %327 }
 0x17d   : > { %786 = vmatpush3.xpose.msk.msra.mxu1 %vm329_vm2, %v328_v11 }
 0x17e   : > { %790 = vmatprep.subr.mxu1 %v1070_v1 }
 0x180   : > { %788 = vmatmul.mubr.msk.f32.vlgmr.msra.gmra.mrb[0].mxu1 %vm329_vm2, %v322_v9 }
 0x181   : > { %792 = vmatprep.mubr.msk.f32.mxu1 %vm1069_vm0, %v1070_v1 }
 0x253   : > { %v400_v12 = vpop.f32.mrb[0].mxu1 }
 0x254   : > { %v789_v13 = vpop.f32.mrb[1].mxu1  ;;  %v405_v14 = vsel %vm404_vm3, %v400_v12, -inf }
 0x255   : > { %406 = vmax.xlane.f32.xlu0 %v405_v14 }
 0x2e2   : > { %v407_v15 = vpop.xlane.xlu0 %406 }
 0x2e3   : > { %v408_v16 = vsub.f32 %v400_v12, %v407_v15 }
 0x2e5   : > { %v409_v17 = vmul.f32 1.442695, %v408_v16 }
 0x2e7   : > { %912 = vpow2.f32 %v409_v17 }
 0x2f1   : > { %v913_v18 = vpop.eup %912 }
 0x2f2   : > { %v411_v19 = vsel %vm404_vm3, %v913_v18, 0.0 }
 0x2f3   : > { %412 = vadd.xlane.f32.xlu1 %v411_v19 }
 0x304   : > { %417 = vrot.lane.b32.xlu1 %v322_v9, %s1072_s1  ;;  %s1372_s1 = scalar_lea.vmem [#allocation5], %s1254_s13 }
 0x380   : > { %v413_v21 = vpop.xlane.xlu1 %412 }
 0x381   : > { %914 = vrcp.f32 %v413_v21 }
 0x384   : > { %v418_v22 = vpop.permute.xlu1 %417 }
 0x385   : > { %791 = vmatpush3.msra.mxu1 %v418_v22 }
 0x38b   : > { %v915_v23 = vpop.eup %914 }
 0x38c   : > { %v415_v24 = vmul.f32 %v915_v23, %v913_v18 }
 0x38e   : > { %416 = vst.msk [vmem:[%s1372_s1] sm:$0xff] %vm404_vm3, %v415_v24  ;;  %793 = vmatmul.mubr.msk.f32.vlgmr.msra.gmra.mrb[2].mxu1 %vm404_vm3, %v415_v24 }
 0x461   : > { %v489_v25 = vpop.f32.mrb[2].mxu1 }
 0x462   : > { %v794_v26 = vpop.f32.mrb[3].mxu1  ;;  %798 = vmatmul.mubr.msk.f32.vlgmr.msra.gmra.mrb[2].mxu0 %vm329_vm2, %v489_v25 }
 0x530   : > { %576 = sbr.rel (%p753_p5) target bundleno = 1335 (0x537), region = 40 }
 0x535   : > { %v569_v27 = vpop.f32.mrb[2].mxu0 }
 0x536   : > { %v799_v28 = vpop.f32.mrb[3].mxu0 }
 0x537 PF: > { %v578_v30 = vld [vmem:[#allocation2] sm:$0xff]  ;;  %p754_p6 = scmp.ne.s32.totalorder %s1050_s24, 7 }
 0x538   : > { %v579_v31 = vadd.f32 %v578_v30, %v569_v27  ;;  %s1392_s3 = sld [smem:[#allocation15_spill]] (!%p754_p6) }
 0x539   : > { %584 = sbr.rel (%p754_p6) target bundleno = 1349 (0x545), region = 44 }
 0x53a   : > { %580 = vst.msk [vmem:[#allocation2] sm:$0xff] %vm252_vm1, %v579_v31 }
 0x53e   : > { %v755_v33 = vld [vmem:[%s1392_s3] ss:$0 sm:$0xff] (!%p754_p6) }
 0x541   : > { %v585_v32 = vld [vmem:[#allocation2] sm:$0xff] }
 0x542   : > { %v593_v34 = vadd.f32 %v755_v33, %v585_v32 }
 0x544   : > { %594 = vst.msk [vmem:[%s233_s9] sm:$0xff] %vm252_vm1, %v593_v34 }
 0x545 PF: > { %s758_s8 = sshll.u32 %s1054_s25, 7  ;;  %s1393_s4 = sld [smem:[#allocation16_spill]] }
 0x546   : > { %s614_s0 = sshll.u32 %s233_s9, 4  ;;  %s1394_s2 = sand.u32 1, %s1042_s22   ;;  %s615_s0 = int_to_ptr.vmem [resolvable:$true] %s614_s0 }
 0x547   : > { %s596_s7 = scalar_lea.sflag [#allocation4], %s1394_s2  ;;  %s916_s27 = scalar_lea.vmem %s615_s0, 128 }
 0x548   : > { %p917_p8 = scmp.ne.s32.totalorder %s615_s0, %s916_s27  ;;  %s1074_s15 = smov [#allocation3]  }
 0x549   : > { %s920_s16 = sshll.u32 %s1074_s15, 4  ;;  %s921_s16 = int_to_ptr.vmem [resolvable:$false] %s920_s16 }
 0x54a   : > { %p918_p9 = pnand %p917_p8, %p1177_p3  ;;  %s922_s3 = scalar_lea.vmem %s921_s16, 256 }
 0x54b   : > { %s1275_s1 = scalar_lea.hbm %s1393_s4, %s758_s8  ;;  %p923_p11 = scmp.lt.s32.totalorder %s615_s0, %s921_s16 }
 0x54c   : > { %p919_p10 = pneg %p918_p9  ;;  %p924_p0 = scmp.lt.s32.totalorder %s922_s3, %s916_s27 }
 0x54e   : > { %p925_p1 = por %p924_p0, %p923_p11 }
 0x550   : > { %p926_p4 = pnand %p925_p1, %p919_p10 }
 0x552   : > { %929 = shalt.err (!%p926_p4)
}
 0x553   : > { %s930_s2 = scalar_lea.hbm %s1275_s1, 128  ;;  %s934_s8 = scalar_lea.hbm %s1393_s4, 256 }
 0x554   : > { %p931_p2 = scmp.ne.s32.totalorder %s1275_s1, %s930_s2  ;;  %p935_p8 = scmp.lt.u32.totalorder %s1275_s1, %s1393_s4 }
 0x555   : > { %p936_p9 = scmp.lt.u32.totalorder %s934_s8, %s930_s2  ;;  %p938_p11 = scmp.lt.u32.totalorder %s930_s2, %s1275_s1 }
 0x556   : > { %p932_p5 = pnand %p931_p2, %p1177_p3 }
 0x557   : > { %p937_p10 = por %p936_p9, %p935_p8 }
 0x558   : > { %p933_p6 = pneg %p932_p5 }
 0x559   : > { %p939_p0 = por %p938_p11, %p937_p10 }
 0x55b   : > { %p940_p1 = pnand %p939_p0, %p933_p6 }
 0x55d   : > { %943 = shalt.err (!%p940_p1)
}
 0x55e   : > { %806 = dma.vmem_to_hbm [thread:$0]  (%p1177_p3), %s615_s0, 128, %s1275_s1, %s596_s7  }
 0x55f   : > { %s759_s3 = sshll.u32 %s1054_s25, 3  ;;  %s1395_s27 = scalar_lea.vmem [#allocation5], %s1254_s13 }
 0x560   : > { %s629_s16 = sshll.u32 %s1395_s27, 4  ;;  %s625_s12 = sadd.s32 %s1050_s24, %s759_s3  ;;  %s1300_s16 = int_to_ptr.vmem [resolvable:$true] %s629_s16 }
 0x561   : > { %s760_s2 = sshll.u32 %s625_s12, 7  ;;  %s1396_s11 = sand.u32 1, %s1030_s19  }
 0x562   : > { %s627_s10 = scalar_lea.hbm %s1368_s5, %s760_s2  ;;  %s601_s15 = scalar_lea.sflag [#allocation6], %s1396_s11 }
 0x563   : > { %s944_s4 = scalar_lea.vmem %s1300_s16, 128  ;;  %s1075_s0 = smov [#allocation5]  }
 0x564   : > { %p945_p4 = scmp.ne.s32.totalorder %s1300_s16, %s944_s4  ;;  %s948_s25 = sshll.u32 %s1075_s0, 4  ;;  %s949_s25 = int_to_ptr.vmem [resolvable:$false] %s948_s25 }
 0x565   : > { %s950_s24 = scalar_lea.vmem %s949_s25, 256  ;;  %p951_p5 = scmp.lt.s32.totalorder %s1300_s16, %s949_s25 }
 0x566   : > { %p946_p3 = pnand %p945_p4, %p1206_p12  ;;  %p952_p6 = scmp.lt.s32.totalorder %s950_s24, %s944_s4 }
 0x568   : > { %p947_p2 = pneg %p946_p3  ;;  %p953_p8 = por %p952_p6, %p951_p5 }
 0x56a   : > { %p954_p9 = pnand %p953_p8, %p947_p2 }
 0x56c   : > { %957 = shalt.err (!%p954_p9)
}
 0x56d   : > { %s958_s7 = scalar_lea.hbm %s627_s10, 128  ;;  %s962_s3 = scalar_lea.hbm %s1368_s5, 2048 }
 0x56e   : > { %p959_p10 = scmp.ne.s32.totalorder %s627_s10, %s958_s7  ;;  %p963_p1 = scmp.lt.u32.totalorder %s627_s10, %s1368_s5 }
 0x56f   : > { %p964_p4 = scmp.lt.u32.totalorder %s962_s3, %s958_s7  ;;  %p966_p13 = scmp.lt.u32.totalorder %s958_s7, %s627_s10 }
 0x570   : > { %p960_p11 = pnand %p959_p10, %p1206_p12 }
 0x571   : > { %p965_p3 = por %p964_p4, %p963_p1 }
 0x572   : > { %p961_p0 = pneg %p960_p11 }
 0x573   : > { %p967_p5 = por %p966_p13, %p965_p3 }
 0x575   : > { %p968_p2 = pnand %p967_p5, %p961_p0 }
 0x577   : > { %971 = shalt.err (!%p968_p2)
}
 0x578   : > { %807 = dma.vmem_to_hbm [thread:$0]  (%p1206_p12), %s1300_s16, 128, %s627_s10, %s601_s15  }
 0x579 PF: > { %p817_p6 = scmp.ge.s32.totalorder %s1066_s28, 2  ;;  %s641_s4 = sand.u32 1, %s1038_s21  }
 0x57a   : > { %s642_s2 = scalar_lea.sflag [#allocation4], %s641_s4 }
 0x57b   : > { %p811_p8 = pnand %p817_p6, %p1194_p7 }
 0x57d   : > { %1017 = dma.done.wait (!%p811_p8), %s642_s2, 128  }
 0x57e   : > { %1019 = vsyncadd (!%p811_p8), %s642_s2, 4294967168  ;;  %s650_s9 = sand.u32 1, %s1026_s18   ;;  %p1397_p13 = scmp.ne.s32.totalorder %s1388_s6, 0 }
 0x57f   : > { %s651_s8 = scalar_lea.sflag [#allocation6], %s650_s9 }
 0x580   : > { %p814_p9 = pnand %p817_p6, %p1397_p13 }
 0x582   : > { %1021 = dma.done.wait (!%p814_p9), %s651_s8, 128  }
 0x583   : > { %1023 = vsyncadd (!%p814_p9), %s651_s8, 4294967168  ;;  %s22_s28 = sadd.s32 1, %s1066_s28   ;;  %s1398_s25 = sld [smem:[#allocation9_spill]] }
 0x584   : > { %p19_p12 = scmp.ge.s32.totalorder %s22_s28, 18   ;;  %s1399_s14 = sld [smem:[#allocation10_spill]] }
 0x585   : > { %s1400_s27 = sld [smem:[#allocation11_spill]]  ;;  %s1401_s18 = smov %s1030_s19 }
 0x586   : > { %s1402_s19 = smov %s1034_s20  ;;  %s1403_s20 = smov %s1214_s30 }
 0x587   : > { %s1404_s21 = smov %s1042_s22  ;;  %s1405_s22 = smov %s1046_s23 }
 0x588   : > { %s1406_s23 = smov %s1211_s29  ;;  %s1407_s24 = smov %s1058_s26 }
 0x589   :  { %21 = sbr.rel (!%p19_p12) target bundleno = 15 (0xf), region = 98 }
 0x58a   : > { %s1408_s26 = smov %s1399_s14 }
 0x590   :  { %656 = vsyncpa [#allocation4], 1 }
 0x591   :  { %658 = vsyncpa [#allocation4 + $0x1], 1 }
 0x592   :  { %659 = vsyncpa [#allocation6], 1 }
 0x593   :  { %661 = vsyncpa [#allocation6 + $0x1], 1 }

</bundles_post_ra>
